<compile_context>
chip_gen: v6e
topology: v6e:2x2x1
jax: 0.10.0
libtpu: 0.0.40
codegen_flags: <defaults>
</compile_context>

<pallas_src>
import functools

import jax
import jax.numpy as jnp
import numpy as np
from jax.experimental import pallas as pl
from jax.experimental.pallas import tpu as pltpu


def dual_adain_resblk_kernel(x_ref, w1_ref, w2_ref, ab_ref, mask_ref,
                             params_ref, o_ref, tap_ref, *, H, W, Cp):
    # x_ref   : (1, Cp, HW)   one batch element, lane-dense spatial axis.
    # w1/w2   : (Cp, 9*Cp)    K-stacked weights, w[co, k*Cp+ci]; w2 pre-scaled.
    # ab_ref  : (1, 2, Cp, 1) per-batch AdaIN alpha/beta (host-computed).
    # mask_ref: (8, 1, HW)    f32 border-validity masks for the off-center taps.
    # params  : SMEM (6,)     [bias1a, prelu1_w, bias1b, bias2a, prelu2_w, bias2b]
    # tap_ref : (9*Cp, HW)    f32 VMEM scratch holding the K-stacked conv operand.
    HW = H * W

    bias1a = params_ref[0]
    prelu1 = params_ref[1]
    bias1b = params_ref[2]
    bias2a = params_ref[3]
    prelu2 = params_ref[4]
    bias2b = params_ref[5]

    def build_taps(act):
        # Fill tap_ref[k*Cp:(k+1)*Cp, :] with the k-th shifted (and border-
        # masked) view of `act`; realizes a 3x3, stride=1, pad=1 receptive field.
        m = 0
        for k in range(9):
            oy, ox = k // 3 - 1, k % 3 - 1
            if oy == 0 and ox == 0:
                tap_ref[pl.ds(k * Cp, Cp), :] = act          # center tap
            else:
                shift = (-(oy * W + ox)) % HW                # rolled[n] == act[n + oy*W + ox]
                tap_ref[pl.ds(k * Cp, Cp), :] = (
                    pltpu.roll(act, shift, 1) * mask_ref[m])
                m += 1

    # --- branch 1: bias -> PReLU -> bias -> conv1 -> AdaIN --------------------
    t1 = x_ref[0] + bias1a
    act1 = jnp.where(t1 >= 0, t1, prelu1 * t1) + bias1b
    build_taps(act1)
    acc1 = jnp.dot(w1_ref[...], tap_ref[...],
                   preferred_element_type=jnp.float32)        # single MXU dot

    ab = ab_ref[0]                                            # (2, Cp, 1)
    out = acc1 * ab[0] + ab[1]                                # AdaIN

    # --- branch 2: bias -> PReLU -> bias -> conv2 (scale folded in weights) --
    t2 = out + bias2a
    act2 = jnp.where(t2 >= 0, t2, prelu2 * t2) + bias2b
    build_taps(act2)
    acc2 = jnp.dot(w2_ref[...], tap_ref[...],
                   preferred_element_type=jnp.float32)

    # Residual add: re-read the identity from the input buffer (not kept live).
    o_ref[0] = (acc2 + x_ref[0]).astype(o_ref.dtype)


def dual_adain_resblk(x_nchw, w1_oihw, w2_oihw, sa, sb, params, scale):
    """x_nchw: (B,C,H,W) f32; w*: (C,C,3,3); sa/sb: (2,B,C); params: (6,); scale: scalar."""
    B, C, H, W = x_nchw.shape
    HW = H * W
    Cp = ((C + 7) // 8) * 8                      # pad channels to full sublanes

    x_flat = x_nchw.reshape(B, C, HW)            # pure reshape, no transpose
    if Cp != C:
        x_flat = jnp.pad(x_flat, ((0, 0), (0, Cp - C), (0, 0)))

    def stack_weights(w_oihw, factor):
        w = w_oihw * factor
        if Cp != C:
            w = jnp.pad(w, ((0, Cp - C), (0, Cp - C), (0, 0), (0, 0)))
        # (O,I,KH,KW) -> (O,KH,KW,I) -> (Cp, 9*Cp); entry [co, (ky*3+kx)*Cp + ci].
        return jnp.transpose(w, (0, 2, 3, 1)).reshape(Cp, 9 * Cp)

    w1 = stack_weights(w1_oihw, 1.0)
    w2 = stack_weights(w2_oihw, scale)           # fold scalar `scale` into conv2

    # AdaIN affine params computed host-side (O(B*C) scalars).
    alpha = sb[0] / sa[0]                        # (B, C)
    beta = sb[1] - sa[1] * alpha                 # (B, C)
    if Cp != C:
        alpha = jnp.pad(alpha, ((0, 0), (0, Cp - C)), constant_values=1.0)
        beta = jnp.pad(beta, ((0, 0), (0, Cp - C)))
    ab = jnp.stack([alpha, beta], axis=1).reshape(B, 2, Cp, 1)

    # Static border-validity masks (padding=1), built once: (8, 1, HW) f32.
    lin = np.arange(HW)
    row, col = lin // W, lin % W
    mask_list = []
    for k in range(9):
        oy, ox = k // 3 - 1, k % 3 - 1
        if oy == 0 and ox == 0:
            continue
        valid = ((row + oy >= 0) & (row + oy < H) &
                 (col + ox >= 0) & (col + ox < W))
        mask_list.append(valid.astype(np.float32))
    masks = jnp.asarray(np.stack(mask_list).reshape(8, 1, HW))

    kernel = functools.partial(dual_adain_resblk_kernel, H=H, W=W, Cp=Cp)

    # Note: at these toy shapes folding B into the lane axis (grid=()) would
    # also work; grid=(B,) + "parallel" is kept for generality / v7x dual-TC.
    out_flat = pl.pallas_call(
        kernel,
        out_shape=jax.ShapeDtypeStruct((B, Cp, HW), jnp.float32),
        grid_spec=pltpu.PrefetchScalarGridSpec(
            num_scalar_prefetch=0,
            grid=(B,),
            in_specs=[
                pl.BlockSpec((1, Cp, HW), lambda b: (b, 0, 0)),          # x
                pl.BlockSpec(memory_space=pltpu.MemorySpace.VMEM),       # w1 (resident)
                pl.BlockSpec(memory_space=pltpu.MemorySpace.VMEM),       # w2 (resident)
                pl.BlockSpec((1, 2, Cp, 1), lambda b: (b, 0, 0, 0)),     # alpha/beta
                pl.BlockSpec(memory_space=pltpu.MemorySpace.VMEM),       # border masks
                pl.BlockSpec(memory_space=pltpu.MemorySpace.SMEM),       # scalar params
            ],
            out_specs=pl.BlockSpec((1, Cp, HW), lambda b: (b, 0, 0)),
            scratch_shapes=[pltpu.VMEM((9 * Cp, HW), jnp.float32)],      # K-stacked taps
        ),
        compiler_params=pltpu.CompilerParams(
            dimension_semantics=("parallel",)),
    )(x_flat, w1, w2, ab, masks, params)

    return out_flat[:, :C, :].reshape(B, C, H, W)


def ref_forward(x_nchw, sa, sb, w1_oihw, w2_oihw, params, scale):
    """Pure-JAX NCHW reference mirroring the PyTorch module exactly."""
    bias1a, prelu1, bias1b, bias2a, prelu2, bias2b = (params[i] for i in range(6))

    def prelu(t, w):
        return jnp.where(t >= 0, t, w * t)

    def conv(t, w):
        return jax.lax.conv_general_dilated(
            t, w, window_strides=(1, 1), padding=((1, 1), (1, 1)),
            dimension_numbers=("NCHW", "OIHW", "NCHW"))

    identity = x_nchw
    out = prelu(x_nchw + bias1a, prelu1)
    out = conv(out + bias1b, w1_oihw)
    alpha = (sb[0] / sa[0])[:, :, None, None]
    beta = (sb[1] - sa[1] * (sb[0] / sa[0]))[:, :, None, None]
    out = out * alpha + beta
    out = prelu(out + bias2a, prelu2)
    out = conv(out + bias2b, w2_oihw)
    out = out * scale
    return out + identity


if __name__ == "__main__":
    B, C, H, W = 2, 4, 16, 16
    key = jax.random.PRNGKey(0)
    k1, k2, k3, k4, k5, k6, k7 = jax.random.split(key, 7)

    # Inputs (PyTorch convention): x is NCHW; sa/sb are per-(batch, channel)
    # style statistics stored as (2, B, C).
    x_nchw = jax.random.normal(k1, (B, C, H, W), jnp.float32)
    sa = jnp.stack([
        jax.random.uniform(k4, (B, C), jnp.float32, 0.5, 1.5),   # keep sa[0] != 0
        0.1 * jax.random.normal(k5, (B, C), jnp.float32),
    ])
    sb = jnp.stack([
        jax.random.uniform(k6, (B, C), jnp.float32, 0.5, 1.5),
        0.1 * jax.random.normal(k7, (B, C), jnp.float32),
    ])

    # Module parameters (non-trivial values so every folded path is exercised):
    # [bias1a, prelu1_w, bias1b, bias2a, prelu2_w, bias2b] and scalar scale.
    w1_oihw = 0.1 * jax.random.normal(k2, (C, C, 3, 3), jnp.float32)
    w2_oihw = 0.1 * jax.random.normal(k3, (C, C, 3, 3), jnp.float32)
    params = jnp.array([0.1, 0.25, -0.05, 0.2, 0.3, 0.15], jnp.float32)
    scale = jnp.float32(0.8)

    out = dual_adain_resblk(x_nchw, w1_oihw, w2_oihw, sa, sb, params, scale)
    jax.block_until_ready(out)

    ref = ref_forward(x_nchw, sa, sb, w1_oihw, w2_oihw, params, scale)
    np.testing.assert_allclose(np.asarray(out), np.asarray(ref),
                               rtol=1e-4, atol=1e-4)
    print("KERNEL_OK")
</pallas_src>

<mosaic_0001>
module attributes {stable_mosaic.version = 11 : i64} {
  func.func @dual_adain_resblk_kernel(%arg0: i32, %arg1: memref<1x8x256xf32, #tpu.memory_space<vmem>>, %arg2: memref<8x72xf32, #tpu.memory_space<vmem>>, %arg3: memref<8x72xf32, #tpu.memory_space<vmem>>, %arg4: memref<1x2x8x1xf32, #tpu.memory_space<vmem>>, %arg5: memref<8x1x256xf32, #tpu.memory_space<vmem>>, %arg6: memref<6xf32, #tpu.memory_space<smem>>, %arg7: memref<1x8x256xf32, #tpu.memory_space<vmem>>, %arg8: memref<72x256xf32, #tpu.memory_space<vmem>>) attributes {dimension_semantics = [#tpu.dimension_semantics<parallel>], iteration_bounds = array<i64: 2>, scalar_prefetch = 0 : i64, scratch_operands = 1 : i64, tpu.core_type = #tpu.core_type<tc>, window_params = [{transform_indices = @transform_0, window_bounds = array<i64: 1, 8, 256>}, {pipeline_mode = #tpu.pipeline_mode<synchronous>, transform_indices = @transform_1, window_bounds = array<i64: 8, 72>}, {pipeline_mode = #tpu.pipeline_mode<synchronous>, transform_indices = @transform_2, window_bounds = array<i64: 8, 72>}, {transform_indices = @transform_3, window_bounds = array<i64: 1, 2, 8, 1>}, {pipeline_mode = #tpu.pipeline_mode<synchronous>, transform_indices = @transform_4, window_bounds = array<i64: 8, 1, 256>}, {transform_indices = @transform_5, window_bounds = array<i64: 6>}, {transform_indices = @transform_6, window_bounds = array<i64: 1, 8, 256>}]} {
    %c0 = arith.constant 0 : index
    %0 = memref.load %arg6[%c0] : memref<6xf32, #tpu.memory_space<smem>>
    %c1 = arith.constant 1 : index
    %1 = memref.load %arg6[%c1] : memref<6xf32, #tpu.memory_space<smem>>
    %c2 = arith.constant 2 : index
    %2 = memref.load %arg6[%c2] : memref<6xf32, #tpu.memory_space<smem>>
    %c3 = arith.constant 3 : index
    %3 = memref.load %arg6[%c3] : memref<6xf32, #tpu.memory_space<smem>>
    %c4 = arith.constant 4 : index
    %4 = memref.load %arg6[%c4] : memref<6xf32, #tpu.memory_space<smem>>
    %c5 = arith.constant 5 : index
    %5 = memref.load %arg6[%c5] : memref<6xf32, #tpu.memory_space<smem>>
    %c0_0 = arith.constant 0 : index
    %c0_1 = arith.constant 0 : index
    %c0_2 = arith.constant 0 : index
    %6 = vector.load %arg1[%c0_0, %c0_1, %c0_2] : memref<1x8x256xf32, #tpu.memory_space<vmem>>, vector<1x8x256xf32>
    %7 = vector.shape_cast %6 : vector<1x8x256xf32> to vector<8x256xf32>
    %8 = vector.broadcast %0 : f32 to vector<8x256xf32>
    %9 = arith.addf %7, %8 : vector<8x256xf32>
    %cst = arith.constant 0.000000e+00 : f32
    %10 = vector.broadcast %cst : f32 to vector<8x256xf32>
    %11 = arith.cmpf oge, %9, %10 : vector<8x256xf32>
    %12 = vector.broadcast %1 : f32 to vector<8x256xf32>
    %13 = arith.mulf %12, %9 : vector<8x256xf32>
    %14 = arith.select %11, %9, %13 : vector<8x256xi1>, vector<8x256xf32>
    %15 = vector.broadcast %2 : f32 to vector<8x256xf32>
    %16 = arith.addf %14, %15 : vector<8x256xf32>
    %c17_i32 = arith.constant 17 : i32
    %17 = tpu.dynamic_rotate %16 by %c17_i32 dim 1 : vector<8x256xf32>, i32 -> vector<8x256xf32>
    %c0_3 = arith.constant 0 : index
    %c0_4 = arith.constant 0 : index
    %c0_5 = arith.constant 0 : index
    %18 = vector.load %arg5[%c0_3, %c0_4, %c0_5] : memref<8x1x256xf32, #tpu.memory_space<vmem>>, vector<1x1x256xf32>
    %19 = vector.shape_cast %18 : vector<1x1x256xf32> to vector<1x256xf32>
    %20 = vector.broadcast %19 : vector<1x256xf32> to vector<8x256xf32>
    %21 = arith.mulf %17, %20 : vector<8x256xf32>
    %c0_6 = arith.constant 0 : index
    %c0_7 = arith.constant 0 : index
    %22 = vector.load %arg8[%c0_6, %c0_7] : memref<72x256xf32, #tpu.memory_space<vmem>>, vector<8x256xf32>
    tpu.vector_store %arg8[%c0_6, %c0_7], %21 {strides = array<i32>} : memref<72x256xf32, #tpu.memory_space<vmem>>, vector<8x256xf32>,
    %c16_i32 = arith.constant 16 : i32
    %23 = tpu.dynamic_rotate %16 by %c16_i32 dim 1 : vector<8x256xf32>, i32 -> vector<8x256xf32>
    %c1_8 = arith.constant 1 : index
    %c0_9 = arith.constant 0 : index
    %c0_10 = arith.constant 0 : index
    %24 = vector.load %arg5[%c1_8, %c0_9, %c0_10] : memref<8x1x256xf32, #tpu.memory_space<vmem>>, vector<1x1x256xf32>
    %25 = vector.shape_cast %24 : vector<1x1x256xf32> to vector<1x256xf32>
    %26 = vector.broadcast %25 : vector<1x256xf32> to vector<8x256xf32>
    %27 = arith.mulf %23, %26 : vector<8x256xf32>
    %c8 = arith.constant 8 : index
    %c0_11 = arith.constant 0 : index
    %28 = vector.load %arg8[%c8, %c0_11] : memref<72x256xf32, #tpu.memory_space<vmem>>, vector<8x256xf32>
    tpu.vector_store %arg8[%c8, %c0_11], %27 {strides = array<i32>} : memref<72x256xf32, #tpu.memory_space<vmem>>, vector<8x256xf32>,
    %c15_i32 = arith.constant 15 : i32
    %29 = tpu.dynamic_rotate %16 by %c15_i32 dim 1 : vector<8x256xf32>, i32 -> vector<8x256xf32>
    %c2_12 = arith.constant 2 : index
    %c0_13 = arith.constant 0 : index
    %c0_14 = arith.constant 0 : index
    %30 = vector.load %arg5[%c2_12, %c0_13, %c0_14] : memref<8x1x256xf32, #tpu.memory_space<vmem>>, vector<1x1x256xf32>
    %31 = vector.shape_cast %30 : vector<1x1x256xf32> to vector<1x256xf32>
    %32 = vector.broadcast %31 : vector<1x256xf32> to vector<8x256xf32>
    %33 = arith.mulf %29, %32 : vector<8x256xf32>
    %c16 = arith.constant 16 : index
    %c0_15 = arith.constant 0 : index
    %34 = vector.load %arg8[%c16, %c0_15] : memref<72x256xf32, #tpu.memory_space<vmem>>, vector<8x256xf32>
    tpu.vector_store %arg8[%c16, %c0_15], %33 {strides = array<i32>} : memref<72x256xf32, #tpu.memory_space<vmem>>, vector<8x256xf32>,
    %c1_i32 = arith.constant 1 : i32
    %35 = tpu.dynamic_rotate %16 by %c1_i32 dim 1 : vector<8x256xf32>, i32 -> vector<8x256xf32>
    %c3_16 = arith.constant 3 : index
    %c0_17 = arith.constant 0 : index
    %c0_18 = arith.constant 0 : index
    %36 = vector.load %arg5[%c3_16, %c0_17, %c0_18] : memref<8x1x256xf32, #tpu.memory_space<vmem>>, vector<1x1x256xf32>
    %37 = vector.shape_cast %36 : vector<1x1x256xf32> to vector<1x256xf32>
    %38 = vector.broadcast %37 : vector<1x256xf32> to vector<8x256xf32>
    %39 = arith.mulf %35, %38 : vector<8x256xf32>
    %c24 = arith.constant 24 : index
    %c0_19 = arith.constant 0 : index
    %40 = vector.load %arg8[%c24, %c0_19] : memref<72x256xf32, #tpu.memory_space<vmem>>, vector<8x256xf32>
    tpu.vector_store %arg8[%c24, %c0_19], %39 {strides = array<i32>} : memref<72x256xf32, #tpu.memory_space<vmem>>, vector<8x256xf32>,
    %c32 = arith.constant 32 : index
    %c0_20 = arith.constant 0 : index
    %41 = vector.load %arg8[%c32, %c0_20] : memref<72x256xf32, #tpu.memory_space<vmem>>, vector<8x256xf32>
    tpu.vector_store %arg8[%c32, %c0_20], %16 {strides = array<i32>} : memref<72x256xf32, #tpu.memory_space<vmem>>, vector<8x256xf32>,
    %c255_i32 = arith.constant 255 : i32
    %42 = tpu.dynamic_rotate %16 by %c255_i32 dim 1 : vector<8x256xf32>, i32 -> vector<8x256xf32>
    %c4_21 = arith.constant 4 : index
    %c0_22 = arith.constant 0 : index
    %c0_23 = arith.constant 0 : index
    %43 = vector.load %arg5[%c4_21, %c0_22, %c0_23] : memref<8x1x256xf32, #tpu.memory_space<vmem>>, vector<1x1x256xf32>
    %44 = vector.shape_cast %43 : vector<1x1x256xf32> to vector<1x256xf32>
    %45 = vector.broadcast %44 : vector<1x256xf32> to vector<8x256xf32>
    %46 = arith.mulf %42, %45 : vector<8x256xf32>
    %c40 = arith.constant 40 : index
    %c0_24 = arith.constant 0 : index
    %47 = vector.load %arg8[%c40, %c0_24] : memref<72x256xf32, #tpu.memory_space<vmem>>, vector<8x256xf32>
    tpu.vector_store %arg8[%c40, %c0_24], %46 {strides = array<i32>} : memref<72x256xf32, #tpu.memory_space<vmem>>, vector<8x256xf32>,
    %c241_i32 = arith.constant 241 : i32
    %48 = tpu.dynamic_rotate %16 by %c241_i32 dim 1 : vector<8x256xf32>, i32 -> vector<8x256xf32>
    %c5_25 = arith.constant 5 : index
    %c0_26 = arith.constant 0 : index
    %c0_27 = arith.constant 0 : index
    %49 = vector.load %arg5[%c5_25, %c0_26, %c0_27] : memref<8x1x256xf32, #tpu.memory_space<vmem>>, vector<1x1x256xf32>
    %50 = vector.shape_cast %49 : vector<1x1x256xf32> to vector<1x256xf32>
    %51 = vector.broadcast %50 : vector<1x256xf32> to vector<8x256xf32>
    %52 = arith.mulf %48, %51 : vector<8x256xf32>
    %c48 = arith.constant 48 : index
    %c0_28 = arith.constant 0 : index
    %53 = vector.load %arg8[%c48, %c0_28] : memref<72x256xf32, #tpu.memory_space<vmem>>, vector<8x256xf32>
    tpu.vector_store %arg8[%c48, %c0_28], %52 {strides = array<i32>} : memref<72x256xf32, #tpu.memory_space<vmem>>, vector<8x256xf32>,
    %c240_i32 = arith.constant 240 : i32
    %54 = tpu.dynamic_rotate %16 by %c240_i32 dim 1 : vector<8x256xf32>, i32 -> vector<8x256xf32>
    %c6 = arith.constant 6 : index
    %c0_29 = arith.constant 0 : index
    %c0_30 = arith.constant 0 : index
    %55 = vector.load %arg5[%c6, %c0_29, %c0_30] : memref<8x1x256xf32, #tpu.memory_space<vmem>>, vector<1x1x256xf32>
    %56 = vector.shape_cast %55 : vector<1x1x256xf32> to vector<1x256xf32>
    %57 = vector.broadcast %56 : vector<1x256xf32> to vector<8x256xf32>
    %58 = arith.mulf %54, %57 : vector<8x256xf32>
    %c56 = arith.constant 56 : index
    %c0_31 = arith.constant 0 : index
    %59 = vector.load %arg8[%c56, %c0_31] : memref<72x256xf32, #tpu.memory_space<vmem>>, vector<8x256xf32>
    tpu.vector_store %arg8[%c56, %c0_31], %58 {strides = array<i32>} : memref<72x256xf32, #tpu.memory_space<vmem>>, vector<8x256xf32>,
    %c239_i32 = arith.constant 239 : i32
    %60 = tpu.dynamic_rotate %16 by %c239_i32 dim 1 : vector<8x256xf32>, i32 -> vector<8x256xf32>
    %c7 = arith.constant 7 : index
    %c0_32 = arith.constant 0 : index
    %c0_33 = arith.constant 0 : index
    %61 = vector.load %arg5[%c7, %c0_32, %c0_33] : memref<8x1x256xf32, #tpu.memory_space<vmem>>, vector<1x1x256xf32>
    %62 = vector.shape_cast %61 : vector<1x1x256xf32> to vector<1x256xf32>
    %63 = vector.broadcast %62 : vector<1x256xf32> to vector<8x256xf32>
    %64 = arith.mulf %60, %63 : vector<8x256xf32>
    %c64 = arith.constant 64 : index
    %c0_34 = arith.constant 0 : index
    %65 = vector.load %arg8[%c64, %c0_34] : memref<72x256xf32, #tpu.memory_space<vmem>>, vector<8x256xf32>
    tpu.vector_store %arg8[%c64, %c0_34], %64 {strides = array<i32>} : memref<72x256xf32, #tpu.memory_space<vmem>>, vector<8x256xf32>,
    %c0_35 = arith.constant 0 : index
    %c0_36 = arith.constant 0 : index
    %66 = vector.load %arg2[%c0_35, %c0_36] : memref<8x72xf32, #tpu.memory_space<vmem>>, vector<8x72xf32>
    %c0_37 = arith.constant 0 : index
    %c0_38 = arith.constant 0 : index
    %67 = vector.load %arg8[%c0_37, %c0_38] : memref<72x256xf32, #tpu.memory_space<vmem>>, vector<72x256xf32>
    %cst_39 = arith.constant dense<0.000000e+00> : vector<8x256xf32>
    %68 = tpu.matmul %66, %67, %cst_39 {dimension_numbers = #tpu.dot_dimension_numbers<[1], [0], [0], [1], [0, 0, 1, 1], [], []>} : vector<8x72xf32>, vector<72x256xf32>, vector<8x256xf32> -> vector<8x256xf32>
    %c0_40 = arith.constant 0 : index
    %c0_41 = arith.constant 0 : index
    %c0_42 = arith.constant 0 : index
    %c0_43 = arith.constant 0 : index
    %69 = vector.load %arg4[%c0_40, %c0_41, %c0_42, %c0_43] : memref<1x2x8x1xf32, #tpu.memory_space<vmem>>, vector<1x2x8x1xf32>
    %70 = vector.shape_cast %69 : vector<1x2x8x1xf32> to vector<2x8x1xf32>
    %71 = vector.extract_strided_slice %70 {offsets = [0, 0, 0], sizes = [1, 8, 1], strides = [1, 1, 1]} : vector<2x8x1xf32> to vector<1x8x1xf32>
    %72 = vector.shape_cast %71 : vector<1x8x1xf32> to vector<8x1xf32>
    %73 = vector.broadcast %72 : vector<8x1xf32> to vector<8x256xf32>
    %74 = arith.mulf %68, %73 : vector<8x256xf32>
    %75 = vector.extract_strided_slice %70 {offsets = [1, 0, 0], sizes = [1, 8, 1], strides = [1, 1, 1]} : vector<2x8x1xf32> to vector<1x8x1xf32>
    %76 = vector.shape_cast %75 : vector<1x8x1xf32> to vector<8x1xf32>
    %77 = vector.broadcast %76 : vector<8x1xf32> to vector<8x256xf32>
    %78 = arith.addf %74, %77 : vector<8x256xf32>
    %79 = vector.broadcast %3 : f32 to vector<8x256xf32>
    %80 = arith.addf %78, %79 : vector<8x256xf32>
    %cst_44 = arith.constant 0.000000e+00 : f32
    %81 = vector.broadcast %cst_44 : f32 to vector<8x256xf32>
    %82 = arith.cmpf oge, %80, %81 : vector<8x256xf32>
    %83 = vector.broadcast %4 : f32 to vector<8x256xf32>
    %84 = arith.mulf %83, %80 : vector<8x256xf32>
    %85 = arith.select %82, %80, %84 : vector<8x256xi1>, vector<8x256xf32>
    %86 = vector.broadcast %5 : f32 to vector<8x256xf32>
    %87 = arith.addf %85, %86 : vector<8x256xf32>
    %c17_i32_45 = arith.constant 17 : i32
    %88 = tpu.dynamic_rotate %87 by %c17_i32_45 dim 1 : vector<8x256xf32>, i32 -> vector<8x256xf32>
    %c0_46 = arith.constant 0 : index
    %c0_47 = arith.constant 0 : index
    %c0_48 = arith.constant 0 : index
    %89 = vector.load %arg5[%c0_46, %c0_47, %c0_48] : memref<8x1x256xf32, #tpu.memory_space<vmem>>, vector<1x1x256xf32>
    %90 = vector.shape_cast %89 : vector<1x1x256xf32> to vector<1x256xf32>
    %91 = vector.broadcast %90 : vector<1x256xf32> to vector<8x256xf32>
    %92 = arith.mulf %88, %91 : vector<8x256xf32>
    %c0_49 = arith.constant 0 : index
    %c0_50 = arith.constant 0 : index
    %93 = vector.load %arg8[%c0_49, %c0_50] : memref<72x256xf32, #tpu.memory_space<vmem>>, vector<8x256xf32>
    tpu.vector_store %arg8[%c0_49, %c0_50], %92 {strides = array<i32>} : memref<72x256xf32, #tpu.memory_space<vmem>>, vector<8x256xf32>,
    %c16_i32_51 = arith.constant 16 : i32
    %94 = tpu.dynamic_rotate %87 by %c16_i32_51 dim 1 : vector<8x256xf32>, i32 -> vector<8x256xf32>
    %c1_52 = arith.constant 1 : index
    %c0_53 = arith.constant 0 : index
    %c0_54 = arith.constant 0 : index
    %95 = vector.load %arg5[%c1_52, %c0_53, %c0_54] : memref<8x1x256xf32, #tpu.memory_space<vmem>>, vector<1x1x256xf32>
    %96 = vector.shape_cast %95 : vector<1x1x256xf32> to vector<1x256xf32>
    %97 = vector.broadcast %96 : vector<1x256xf32> to vector<8x256xf32>
    %98 = arith.mulf %94, %97 : vector<8x256xf32>
    %c8_55 = arith.constant 8 : index
    %c0_56 = arith.constant 0 : index
    %99 = vector.load %arg8[%c8_55, %c0_56] : memref<72x256xf32, #tpu.memory_space<vmem>>, vector<8x256xf32>
    tpu.vector_store %arg8[%c8_55, %c0_56], %98 {strides = array<i32>} : memref<72x256xf32, #tpu.memory_space<vmem>>, vector<8x256xf32>,
    %c15_i32_57 = arith.constant 15 : i32
    %100 = tpu.dynamic_rotate %87 by %c15_i32_57 dim 1 : vector<8x256xf32>, i32 -> vector<8x256xf32>
    %c2_58 = arith.constant 2 : index
    %c0_59 = arith.constant 0 : index
    %c0_60 = arith.constant 0 : index
    %101 = vector.load %arg5[%c2_58, %c0_59, %c0_60] : memref<8x1x256xf32, #tpu.memory_space<vmem>>, vector<1x1x256xf32>
    %102 = vector.shape_cast %101 : vector<1x1x256xf32> to vector<1x256xf32>
    %103 = vector.broadcast %102 : vector<1x256xf32> to vector<8x256xf32>
    %104 = arith.mulf %100, %103 : vector<8x256xf32>
    %c16_61 = arith.constant 16 : index
    %c0_62 = arith.constant 0 : index
    %105 = vector.load %arg8[%c16_61, %c0_62] : memref<72x256xf32, #tpu.memory_space<vmem>>, vector<8x256xf32>
    tpu.vector_store %arg8[%c16_61, %c0_62], %104 {strides = array<i32>} : memref<72x256xf32, #tpu.memory_space<vmem>>, vector<8x256xf32>,
    %c1_i32_63 = arith.constant 1 : i32
    %106 = tpu.dynamic_rotate %87 by %c1_i32_63 dim 1 : vector<8x256xf32>, i32 -> vector<8x256xf32>
    %c3_64 = arith.constant 3 : index
    %c0_65 = arith.constant 0 : index
    %c0_66 = arith.constant 0 : index
    %107 = vector.load %arg5[%c3_64, %c0_65, %c0_66] : memref<8x1x256xf32, #tpu.memory_space<vmem>>, vector<1x1x256xf32>
    %108 = vector.shape_cast %107 : vector<1x1x256xf32> to vector<1x256xf32>
    %109 = vector.broadcast %108 : vector<1x256xf32> to vector<8x256xf32>
    %110 = arith.mulf %106, %109 : vector<8x256xf32>
    %c24_67 = arith.constant 24 : index
    %c0_68 = arith.constant 0 : index
    %111 = vector.load %arg8[%c24_67, %c0_68] : memref<72x256xf32, #tpu.memory_space<vmem>>, vector<8x256xf32>
    tpu.vector_store %arg8[%c24_67, %c0_68], %110 {strides = array<i32>} : memref<72x256xf32, #tpu.memory_space<vmem>>, vector<8x256xf32>,
    %c32_69 = arith.constant 32 : index
    %c0_70 = arith.constant 0 : index
    %112 = vector.load %arg8[%c32_69, %c0_70] : memref<72x256xf32, #tpu.memory_space<vmem>>, vector<8x256xf32>
    tpu.vector_store %arg8[%c32_69, %c0_70], %87 {strides = array<i32>} : memref<72x256xf32, #tpu.memory_space<vmem>>, vector<8x256xf32>,
    %c255_i32_71 = arith.constant 255 : i32
    %113 = tpu.dynamic_rotate %87 by %c255_i32_71 dim 1 : vector<8x256xf32>, i32 -> vector<8x256xf32>
    %c4_72 = arith.constant 4 : index
    %c0_73 = arith.constant 0 : index
    %c0_74 = arith.constant 0 : index
    %114 = vector.load %arg5[%c4_72, %c0_73, %c0_74] : memref<8x1x256xf32, #tpu.memory_space<vmem>>, vector<1x1x256xf32>
    %115 = vector.shape_cast %114 : vector<1x1x256xf32> to vector<1x256xf32>
    %116 = vector.broadcast %115 : vector<1x256xf32> to vector<8x256xf32>
    %117 = arith.mulf %113, %116 : vector<8x256xf32>
    %c40_75 = arith.constant 40 : index
    %c0_76 = arith.constant 0 : index
    %118 = vector.load %arg8[%c40_75, %c0_76] : memref<72x256xf32, #tpu.memory_space<vmem>>, vector<8x256xf32>
    tpu.vector_store %arg8[%c40_75, %c0_76], %117 {strides = array<i32>} : memref<72x256xf32, #tpu.memory_space<vmem>>, vector<8x256xf32>,
    %c241_i32_77 = arith.constant 241 : i32
    %119 = tpu.dynamic_rotate %87 by %c241_i32_77 dim 1 : vector<8x256xf32>, i32 -> vector<8x256xf32>
    %c5_78 = arith.constant 5 : index
    %c0_79 = arith.constant 0 : index
    %c0_80 = arith.constant 0 : index
    %120 = vector.load %arg5[%c5_78, %c0_79, %c0_80] : memref<8x1x256xf32, #tpu.memory_space<vmem>>, vector<1x1x256xf32>
    %121 = vector.shape_cast %120 : vector<1x1x256xf32> to vector<1x256xf32>
    %122 = vector.broadcast %121 : vector<1x256xf32> to vector<8x256xf32>
    %123 = arith.mulf %119, %122 : vector<8x256xf32>
    %c48_81 = arith.constant 48 : index
    %c0_82 = arith.constant 0 : index
    %124 = vector.load %arg8[%c48_81, %c0_82] : memref<72x256xf32, #tpu.memory_space<vmem>>, vector<8x256xf32>
    tpu.vector_store %arg8[%c48_81, %c0_82], %123 {strides = array<i32>} : memref<72x256xf32, #tpu.memory_space<vmem>>, vector<8x256xf32>,
    %c240_i32_83 = arith.constant 240 : i32
    %125 = tpu.dynamic_rotate %87 by %c240_i32_83 dim 1 : vector<8x256xf32>, i32 -> vector<8x256xf32>
    %c6_84 = arith.constant 6 : index
    %c0_85 = arith.constant 0 : index
    %c0_86 = arith.constant 0 : index
    %126 = vector.load %arg5[%c6_84, %c0_85, %c0_86] : memref<8x1x256xf32, #tpu.memory_space<vmem>>, vector<1x1x256xf32>
    %127 = vector.shape_cast %126 : vector<1x1x256xf32> to vector<1x256xf32>
    %128 = vector.broadcast %127 : vector<1x256xf32> to vector<8x256xf32>
    %129 = arith.mulf %125, %128 : vector<8x256xf32>
    %c56_87 = arith.constant 56 : index
    %c0_88 = arith.constant 0 : index
    %130 = vector.load %arg8[%c56_87, %c0_88] : memref<72x256xf32, #tpu.memory_space<vmem>>, vector<8x256xf32>
    tpu.vector_store %arg8[%c56_87, %c0_88], %129 {strides = array<i32>} : memref<72x256xf32, #tpu.memory_space<vmem>>, vector<8x256xf32>,
    %c239_i32_89 = arith.constant 239 : i32
    %131 = tpu.dynamic_rotate %87 by %c239_i32_89 dim 1 : vector<8x256xf32>, i32 -> vector<8x256xf32>
    %c7_90 = arith.constant 7 : index
    %c0_91 = arith.constant 0 : index
    %c0_92 = arith.constant 0 : index
    %132 = vector.load %arg5[%c7_90, %c0_91, %c0_92] : memref<8x1x256xf32, #tpu.memory_space<vmem>>, vector<1x1x256xf32>
    %133 = vector.shape_cast %132 : vector<1x1x256xf32> to vector<1x256xf32>
    %134 = vector.broadcast %133 : vector<1x256xf32> to vector<8x256xf32>
    %135 = arith.mulf %131, %134 : vector<8x256xf32>
    %c64_93 = arith.constant 64 : index
    %c0_94 = arith.constant 0 : index
    %136 = vector.load %arg8[%c64_93, %c0_94] : memref<72x256xf32, #tpu.memory_space<vmem>>, vector<8x256xf32>
    tpu.vector_store %arg8[%c64_93, %c0_94], %135 {strides = array<i32>} : memref<72x256xf32, #tpu.memory_space<vmem>>, vector<8x256xf32>,
    %c0_95 = arith.constant 0 : index
    %c0_96 = arith.constant 0 : index
    %137 = vector.load %arg3[%c0_95, %c0_96] : memref<8x72xf32, #tpu.memory_space<vmem>>, vector<8x72xf32>
    %c0_97 = arith.constant 0 : index
    %c0_98 = arith.constant 0 : index
    %138 = vector.load %arg8[%c0_97, %c0_98] : memref<72x256xf32, #tpu.memory_space<vmem>>, vector<72x256xf32>
    %cst_99 = arith.constant dense<0.000000e+00> : vector<8x256xf32>
    %139 = tpu.matmul %137, %138, %cst_99 {dimension_numbers = #tpu.dot_dimension_numbers<[1], [0], [0], [1], [0, 0, 1, 1], [], []>} : vector<8x72xf32>, vector<72x256xf32>, vector<8x256xf32> -> vector<8x256xf32>
    %c0_100 = arith.constant 0 : index
    %c0_101 = arith.constant 0 : index
    %c0_102 = arith.constant 0 : index
    %140 = vector.load %arg1[%c0_100, %c0_101, %c0_102] : memref<1x8x256xf32, #tpu.memory_space<vmem>>, vector<1x8x256xf32>
    %141 = vector.shape_cast %140 : vector<1x8x256xf32> to vector<8x256xf32>
    %142 = arith.addf %139, %141 : vector<8x256xf32>
    %c0_103 = arith.constant 0 : index
    %c0_104 = arith.constant 0 : index
    %c0_105 = arith.constant 0 : index
    %143 = vector.load %arg7[%c0_103, %c0_104, %c0_105] : memref<1x8x256xf32, #tpu.memory_space<vmem>>, vector<1x8x256xf32>
    %144 = vector.shape_cast %143 : vector<1x8x256xf32> to vector<8x256xf32>
    %145 = vector.shape_cast %142 : vector<8x256xf32> to vector<1x8x256xf32>
    tpu.vector_store %arg7[%c0_103, %c0_104, %c0_105], %145 {strides = array<i32>} : memref<1x8x256xf32, #tpu.memory_space<vmem>>, vector<1x8x256xf32>,
    return
  }
  func.func @transform_0(%arg0: i32) -> (i32, i32, i32) {
    %c0_i32 = arith.constant 0 : i32
    %c0_i32_0 = arith.constant 0 : i32
    %c0_i32_1 = arith.constant 0 : i32
    return %arg0, %c0_i32, %c0_i32_0 : i32, i32, i32
  }
  func.func @transform_1(%arg0: i32) -> (i32, i32) {
    %c0_i32 = arith.constant 0 : i32
    %c0_i32_0 = arith.constant 0 : i32
    %c0_i32_1 = arith.constant 0 : i32
    return %c0_i32, %c0_i32_0 : i32, i32
  }
  func.func @transform_2(%arg0: i32) -> (i32, i32) {
    %c0_i32 = arith.constant 0 : i32
    %c0_i32_0 = arith.constant 0 : i32
    %c0_i32_1 = arith.constant 0 : i32
    return %c0_i32, %c0_i32_0 : i32, i32
  }
  func.func @transform_3(%arg0: i32) -> (i32, i32, i32, i32) {
    %c0_i32 = arith.constant 0 : i32
    %c0_i32_0 = arith.constant 0 : i32
    %c0_i32_1 = arith.constant 0 : i32
    %c0_i32_2 = arith.constant 0 : i32
    return %arg0, %c0_i32, %c0_i32_0, %c0_i32_1 : i32, i32, i32, i32
  }
  func.func @transform_4(%arg0: i32) -> (i32, i32, i32) {
    %c0_i32 = arith.constant 0 : i32
    %c0_i32_0 = arith.constant 0 : i32
    %c0_i32_1 = arith.constant 0 : i32
    %c0_i32_2 = arith.constant 0 : i32
    return %c0_i32, %c0_i32_0, %c0_i32_1 : i32, i32, i32
  }
  func.func @transform_5(%arg0: i32) -> i32 {
    %c0_i32 = arith.constant 0 : i32
    %c0_i32_0 = arith.constant 0 : i32
    return %c0_i32 : i32
  }
  func.func @transform_6(%arg0: i32) -> (i32, i32, i32) {
    %c0_i32 = arith.constant 0 : i32
    %c0_i32_0 = arith.constant 0 : i32
    %c0_i32_1 = arith.constant 0 : i32
    return %arg0, %c0_i32, %c0_i32_0 : i32, i32, i32
  }
}

</mosaic_0001>

<bundles_post_ra>
// kernel: tpu_custom_call.1
= control target key start
LH: loop header
LB: loop body
LE: loop exit
PB: predicated region body
PF: predicated region fallthrough
CT: control target
= control target key end

     0   :  { %11 = vsyncpa [#allocation4], 0  ;;  %s1773_s0 = inlined_call_operand.vmem [shape: f32[2,8,256], index: 0, kind: input, shape index: {}]   ;;  %s1774_s1 = inlined_call_operand.hbm [shape: f32[8,72], index: 1, kind: input, shape index: {}]   ;;  %s1775_s2 = inlined_call_operand.hbm [shape: f32[8,72], index: 2, kind: input, shape index: {}]   ;;  %s1776_s3 = inlined_call_operand.vmem [shape: f32[2,2,8,1], index: 3, kind: input, shape index: {}]   ;;  %s1777_s4 = inlined_call_operand.hbm [shape: f32[8,1,256], index: 4, kind: input, shape index: {}]   ;;  %s1778_s5 = inlined_call_operand.vmem [shape: f32[6], index: 5, kind: input, shape index: {}]   ;;  %s1779_s6 = inlined_call_operand.hbm [shape: f32[2,8,256], index: 6, kind: output, shape index: {}]  }
   0x1   :  { %12 = vsyncpa [#allocation8], 0 }
   0x2   :  { %13 = vsyncpa [#allocation6], 0 }
   0x3   :  { %14 = vsyncpa [#allocation5], 0 }
   0x4   :  { %16 = vsyncpa [#allocation5 + $0x1], 0  ;;  %s1412_s21 = smov 0   ;;  %s1414_s22 = smov 0  }
   0x5   :  { %s1416_s23 = smov 0   ;;  %s1418_s24 = smov 0  }
   0x6 LB: > { %s1433_s25 = sadd.s32 4294967295, %s1358_s24   ;;  %s1067_s26 = sadd.s32 4294967294, %s1358_s24   ;;  %s1358_s24 = sphi %s1418_s24, %s1799_s24   ;;  %s1354_s23 = sphi %s1416_s23, %s1798_s23   ;;  %s1350_s22 = sphi %s1414_s22, %s1797_s22   ;;  %s1346_s21 = sphi %s1412_s21, %s1796_s21  }
   0x7   : > { %s1437_s27 = sadd.s32 1, %s1358_s24   ;;  %s165_s28 = sadd.s32 1, %s1354_s23 }
   0x8   : > { %s162_s29 = ssub.s32 %s1358_s24, %s1437_s27  ;;  %p175_p0 = scmp.ne.s32.totalorder %s1354_s23, %s1350_s22 }
   0x9   : > { %p163_p1 = scmp.eq.s32.totalorder %s162_s29, 0  ;;  %p176_p2 = scmp.eq.s32.totalorder %s1433_s25, 1 }
   0xa   : > { %p181_p3 = scmp.ne.s32.totalorder %s1350_s22, %s1346_s21  ;;  %p182_p4 = scmp.eq.s32.totalorder %s1067_s26, 1 }
   0xb   : > { %s1448_s30 = scalar_select %p163_p1, %s1354_s23, %s165_s28  }
   0xc   : > { %p1450_p5 = por %p176_p2, %p175_p0  ;;  %p1454_p6 = por %p182_p4, %p181_p3 }
   0xd   : > { %p1068_p7 = scmp.ge.s32.totalorder %s1358_s24, 1  ;;  %p189_p8 = scmp.lt.s32.totalorder %s1358_s24, 3 }
   0xe   : > { %s1783_s7 = scalar_select %p1450_p5, 1, 0 }
   0xf   : > { %s1784_s8 = scalar_select %p1454_p6, 1, 0 }
  0x10   : > { %p1780_p9 = scmp.eq.s32.totalorder %s1433_s25, 0  ;;  %p1461_p10 = pnand %p1068_p7, %p189_p8 }
  0x11   : > { %s1360_s10 = smov [#allocation7]   ;;  %s1361_s12 = smov [#allocation3]  }
  0x12   : > { %s1785_s9 = scalar_select %p1461_p10, 1, 0 }
  0x13   : > { %s213_s11 = sshll.u32 %s1360_s10, 4  ;;  %p1117_p11 = pneg %p1461_p10  ;;  %s214_s11 = int_to_ptr.vmem [resolvable:$true] %s213_s11 }
  0x14   : > { %s202_s13 = sshll.u32 %s1361_s12, 4  ;;  %s1362_s15 = smov [#allocation9]   ;;  %s203_s13 = int_to_ptr.vmem [resolvable:$true] %s202_s13 }
  0x15   : > { %p1469_p12 = pnand %p1780_p9, %p1117_p11  ;;  %s223_s16 = sshll.u32 %s1362_s15, 4  ;;  %s1473_s16 = int_to_ptr.vmem [resolvable:$true] %s223_s16 }
  0x16   : > { %s1204_s17 = scalar_lea.vmem %s214_s11, 128  ;;  %p1212_p3 = scmp.lt.s32.totalorder %s214_s11, %s214_s11 }
  0x17   : > { %p1195_p13 = pneg %p1469_p12  ;;  %p1205_p0 = scmp.ne.s32.totalorder %s214_s11, %s1204_s17 }
  0x18   : > { %p1213_p4 = scmp.lt.s32.totalorder %s1204_s17, %s1204_s17 }
  0x19   : > { %p1207_p1 = pnand %p1205_p0, %p1195_p13 }
  0x1a   : > { %p1214_p7 = por %p1213_p4, %p1212_p3 }
  0x1b   : > { %p1208_p2 = pneg %p1207_p1 }
  0x1d   : > { %p1215_p8 = pnand %p1214_p7, %p1208_p2 }
  0x1f   : > { %1218 = shalt.err (!%p1215_p8)
}
  0x20   : > { %1123 = dma.hbm_to_vmem [thread:$0]  (!%p1469_p12), %s1775_s2, 128, %s214_s11, [#allocation8]  }
  0x21   : > { %s1230_s20 = scalar_lea.vmem %s203_s13, 128  ;;  %p1238_p0 = scmp.lt.s32.totalorder %s203_s13, %s203_s13 }
  0x22   : > { %p1231_p11 = scmp.ne.s32.totalorder %s203_s13, %s1230_s20  ;;  %p1239_p1 = scmp.lt.s32.totalorder %s1230_s20, %s1230_s20 }
  0x24   : > { %p1233_p9 = pnand %p1231_p11, %p1195_p13  ;;  %p1240_p5 = por %p1239_p1, %p1238_p0 }
  0x26   : > { %p1234_p6 = pneg %p1233_p9 }
  0x28   : > { %p1241_p10 = pnand %p1240_p5, %p1234_p6 }
  0x2a   : > { %1244 = shalt.err (!%p1241_p10)
}
  0x2b   : > { %1120 = dma.hbm_to_vmem [thread:$0]  (!%p1469_p12), %s1774_s1, 128, %s203_s13, [#allocation4]  }
  0x2c   : > { %s237_s11 = sshll.u32 %s1778_s5, 4  ;;  %s1256_s12 = scalar_lea.vmem %s1473_s16, 256  ;;  %s238_s11 = int_to_ptr.vmem [resolvable:$true] %s237_s11 }
  0x2d   : > { %p1257_p9 = scmp.ne.s32.totalorder %s1473_s16, %s1256_s12  ;;  %p1264_p10 = scmp.lt.s32.totalorder %s1473_s16, %s1473_s16 }
  0x2e   : > { %p1265_p2 = scmp.lt.s32.totalorder %s1256_s12, %s1256_s12 }
  0x2f   : > { %p1259_p5 = pnand %p1257_p9, %p1195_p13 }
  0x30   : > { %p1266_p3 = por %p1265_p2, %p1264_p10 }
  0x31   : > { %p1260_p6 = pneg %p1259_p5 }
  0x33   : > { %p1267_p4 = pnand %p1266_p3, %p1260_p6 }
  0x35   : > { %1270 = shalt.err (!%p1267_p4)
}
  0x36   : > { %s1363_s15 = smov 32   ;;  %s1364_s13 = smov 2  }
  0x37   : > { %1126 = dma.hbm_to_vmem [thread:$0]  (!%p1469_p12), %s1777_s4, 256, %s1473_s16, [#allocation8], %s1363_s15, %s1363_s15, %s1364_s13  }
  0x38   : > { %s1271_s19 = scalar_lea.vmem %s238_s11, 16  ;;  %p1279_p0 = scmp.lt.s32.totalorder %s238_s11, %s238_s11 }
  0x39   : > { %p1272_p7 = scmp.ne.s32.totalorder %s238_s11, %s1271_s19  ;;  %p1280_p1 = scmp.lt.s32.totalorder %s1271_s19, %s1271_s19 }
  0x3b   : > { %p1274_p8 = pnand %p1272_p7, %p1195_p13  ;;  %p1281_p9 = por %p1280_p1, %p1279_p0 }
  0x3d   : > { %p1275_p11 = pneg %p1274_p8 }
  0x3f   : > { %p1282_p5 = pnand %p1281_p9, %p1275_p11 }
  0x41   : > { %1285 = shalt.err (!%p1282_p5)
}
  0x42   : > { %s1365_s20 = smov [#allocation10]   ;;  %p1787_p6 = scmp.ne.s32.totalorder %s1785_s9, 0 }
  0x43   : > { %1129 = dma.vmem_to_smem (!%p1469_p12), %s238_s11, 16, %s1365_s20, [#allocation6]  }
  0x44   : > { %266 = sbr.rel (%p1787_p6) target bundleno = 809 (0x329), region = 44  ;;  %p1788_p10 = scmp.eq.s32.totalorder (!%p1787_p6), %s1433_s25, 0 }
  0x49   : > { %1329 = dma.done.wait (%p1788_p10), [#allocation4], 128   ;;  %p1789_p2 = pmov %p1788_p10 }
  0x4b   : > { %1331 = vsyncadd (%p1789_p2), [#allocation4], 4294967168  ;;  %p1790_p13 = pmov %p1789_p2 }
  0x4c   : > { %p1791_p3 = pmov %p1789_p2 }
  0x4d   : > { %1333 = dma.done.wait (%p1790_p13), [#allocation8], 384  }
  0x4e   : > { %1335 = vsyncadd (%p1791_p3), [#allocation8], 4294966912  ;;  %p1792_p4 = pmov %p1789_p2 }
  0x4f   : > { %p1793_p12 = pmov %p1789_p2 }
  0x50   : > { %1337 = dma.done.wait (%p1792_p4), [#allocation6], 16  }
  0x51   : > { %1339 = vsyncadd (%p1793_p12), [#allocation6], 4294967280 }
  0x52   : > { %284 = sfence }
  0x53   : > { %p314_p7 = scmp.lt.s32.totalorder %s1433_s25, 1  ;;  %s324_s9 = sld [smem:[#allocation10]]  ;;  %v1371_v13 = vmov 0.0   ;;  %v1373_v14 = vmov 0   ;;  %v349_v17 = vlaneseq  ;;  %v524_v22 = vld [vmem:[#allocation9 + $0xe] sm:$0x3] }
  0x54   : > { %s1084_s14 = sld [smem:[#allocation10 + $0x1]]  ;;  %s1366_s12 = smov 112   ;;  %627 = vmatprep.mubr.f32.mxu0 %v1371_v13  ;;  %929 = vmatprep.mubr.f32.mxu1 %v1371_v13  ;;  %v500_v25 = vld [vmem:[#allocation9 + $0xc] sm:$0x3]  ;;  %v476_v27 = vld [vmem:[#allocation9 + $0xa] sm:$0x3] }
  0x55   : > { %s1530_s16 = scalar_select %p314_p7, %s1433_s25, 1  ;;  %1191 = vset.pattern.permute.xlu0 %v1373_v14  ;;  %1192 = vset.pattern.permute.xlu1 %v1373_v14  ;;  %v357_v18 = vshrl.u32 %v349_v17, 7  ;;  %v1585_v19 = vand.u32 127, %v349_v17  ;;  %v452_v41 = vld [vmem:[#allocation9 + $0x8] sm:$0x3]  ;;  %vm559_vm10 = vcmask 588800  }
  0x56   : > { %s1085_s26 = sld [smem:[#allocation10 + $0x2]]  ;;  %s1367_s15 = smov 111   ;;  %v426_v52 = vld [vmem:[#allocation9 + $0x6] sm:$0x3]  ;;  %v402_v61 = vld [vmem:[#allocation9 + $0x4] sm:$0x3] }
  0x57   : > { %s1096_s28 = sshll.u32 %s1530_s16, 4  ;;  %s1368_s13 = smov 113   ;;  %v1587_v20 = vsub.s32 0, %v357_v18  ;;  %v1589_v21 = vsub.s32 1, %v357_v18  ;;  %vm496_vm2 = vcmp.lt.s32.totalorder %v1585_v19, 112  ;;  %vm520_vm3 = vcmp.lt.s32.totalorder %v1585_v19, 111 }
  0x58   : > { %s318_s11 = scalar_lea.vmem %s1773_s0, %s1096_s28  ;;  %s1369_s17 = smov 127   ;;  %vm472_vm4 = vcmp.lt.s32.totalorder %v1585_v19, 113  ;;  %vm448_vm5 = vcmp.lt.s32.totalorder %v1585_v19, 127  ;;  %vm422_vm6 = vcmp.lt.s32.totalorder %v1585_v19, 1  ;;  %vm398_vm7 = vcmp.lt.s32.totalorder %v1585_v19, 15 }
  0x59   : > { %v1538_v0 = vld [vmem:[%s318_s11] sm:$0xff]  ;;  %v332_v1 = vstv %s324_s9  ;;  %v1540_v2 = vld [vmem:[%s318_s11 + $0x8] sm:$0xff]  ;;  %s1370_s18 = smov 1   ;;  %s1372_s19 = smov 15   ;;  %v533_v26 = vrot.slane %v524_v22, %v1589_v21  ;;  %v529_v28 = vrot.slane %v524_v22, %v1587_v20  ;;  %v505_v29 = vrot.slane %v500_v25, %v1587_v20 }
  0x5a   : > { %v333_v3 = vadd.f32 %v332_v1, %v1538_v0  ;;  %v337_v4 = vstv %s1084_s14  ;;  %v334_v5 = vadd.f32 %v332_v1, %v1540_v2  ;;  %s1374_s20 = smov 16   ;;  %s1375_s29 = smov 17   ;;  %v509_v30 = vrot.slane %v500_v25, %v1589_v21 }
  0x5b   : > { %v481_v36 = vrot.slane %v476_v27, %v1587_v20  ;;  %v485_v39 = vrot.slane %v476_v27, %v1589_v21  ;;  %v457_v50 = vrot.slane %v452_v41, %v1587_v20  ;;  %v461_v51 = vrot.slane %v452_v41, %v1589_v21  ;;  %s1086_s16 = sld [smem:[#allocation10 + $0x3]]  ;;  %s311_s11 = sand.u32 1, %s1350_s22  }
  0x5c   : > { %vm335_vm0 = vcmp.ge.f32.partialorder %v333_v3, 0.0  ;;  %v338_v6 = vmul.f32 %v337_v4, %v333_v3  ;;  %v342_v7 = vstv %s1085_s26  ;;  %vm336_vm1 = vcmp.ge.f32.partialorder %v334_v5, 0.0  ;;  %s323_s26 = scalar_lea.vmem %s1776_s3, %s1096_s28  ;;  %s1087_s28 = sld [smem:[#allocation10 + $0x4]] }
  0x5d   : > { %v339_v8 = vmul.f32 %v337_v4, %v334_v5  ;;  %v634_v15 = vld [vmem:[%s323_s26] sm:$0xff]  ;;  %v635_v16 = vld [vmem:[%s323_s26 + $0x8] sm:$0xff]  ;;  %v431_v59 = vrot.slane %v426_v52, %v1587_v20  ;;  %v435_v60 = vrot.slane %v426_v52, %v1589_v21  ;;  %vm374_vm8 = vcmp.lt.s32.totalorder %v1585_v19, 16  ;;  %s1088_s10 = sld [smem:[#allocation10 + $0x5]]  ;;  %s939_s9 = scalar_lea.sflag [#allocation5], %s311_s11 }
  0x5e   : > { %v340_v9 = vsel %vm335_vm0, %v333_v3, %v338_v6  ;;  %v407_v6 = vrot.slane %v402_v61, %v1587_v20  ;;  %vm351_vm9 = vcmp.lt.s32.totalorder %v1585_v19, 17  ;;  %p1794_p11 = scmp.ne.s32.totalorder %s1783_s7, 0 }
  0x5f   : > { %v1544_v10 = vadd.f32 %v342_v7, %v340_v9  ;;  %v341_v11 = vsel %vm336_vm1, %v334_v5, %v339_v8  ;;  %v378_v8 = vld [vmem:[#allocation9 + $0x2] sm:$0x3] }
  0x60   : > { %v1550_v12 = vadd.f32 %v342_v7, %v341_v11  ;;  %v411_v7 = vrot.slane %v402_v61, %v1589_v21  ;;  %v387_v17 = vrot.slane %v378_v8, %v1589_v21 }
  0x61   : > { %492 = vrot.lane.b32.xlu1 %v1544_v10, %s1366_s12  ;;  %516 = vrot.lane.b32.xlu0 %v1544_v10, %s1367_s15 }
  0x65   : > { %494 = vrot.lane.b32.xlu1 %v1550_v12, %s1366_s12  ;;  %518 = vrot.lane.b32.xlu0 %v1550_v12, %s1367_s15 }
  0x69   : > { %470 = vrot.lane.b32.xlu1 %v1550_v12, %s1368_s13  ;;  %468 = vrot.lane.b32.xlu0 %v1544_v10, %s1368_s13 }
  0x6d   : > { %446 = vrot.lane.b32.xlu1 %v1550_v12, %s1369_s17  ;;  %444 = vrot.lane.b32.xlu0 %v1544_v10, %s1369_s17 }
  0x71   : > { %420 = vrot.lane.b32.xlu1 %v1550_v12, %s1370_s18  ;;  %418 = vrot.lane.b32.xlu0 %v1544_v10, %s1370_s18 }
  0x75   : > { %396 = vrot.lane.b32.xlu1 %v1550_v12, %s1372_s19  ;;  %394 = vrot.lane.b32.xlu0 %v1544_v10, %s1372_s19 }
  0x79   : > { %372 = vrot.lane.b32.xlu1 %v1550_v12, %s1374_s20  ;;  %370 = vrot.lane.b32.xlu0 %v1544_v10, %s1374_s20 }
  0x7d   : > { %347 = vrot.lane.b32.xlu1 %v1550_v12, %s1375_s29  ;;  %345 = vrot.lane.b32.xlu0 %v1544_v10, %s1375_s29 }
  0x81   : > { %638 = vperm.xlu0 %1191, %v634_v15   ;;  %645 = vperm.xlu1 %1192, %v635_v16   ;;  %v383_v16 = vrot.slane %v378_v8, %v1587_v20 }
  0xd3   : > { %v493_v23 = vpop.permute.xlu1 %492  ;;  %v517_v24 = vpop.permute.xlu0 %516 }
  0xd7   : > { %v495_v31 = vpop.permute.xlu1 %494  ;;  %v519_v32 = vpop.permute.xlu0 %518 }
  0xd8   : > { %v498_v33 = vsel %vm496_vm2, %v495_v31, %v493_v23  ;;  %v521_v34 = vsel %vm520_vm3, %v517_v24, %v519_v32  ;;  %v522_v35 = vsel %vm520_vm3, %v519_v32, %v517_v24  ;;  %v497_v37 = vsel %vm496_vm2, %v493_v23, %v495_v31 }
  0xd9   : > { %v537_v38 = vmul.f32 %v533_v26, %v522_v35  ;;  %v536_v40 = vmul.f32 %v529_v28, %v521_v34  ;;  %v513_v42 = vmul.f32 %v509_v30, %v498_v33  ;;  %v512_v45 = vmul.f32 %v505_v29, %v497_v37  ;;  %v540_v35 = vld [vmem:[#allocation3] sm:$0xff] }
  0xdb   : > { %v471_v43 = vpop.permute.xlu1 %470  ;;  %577 = vmatprep.subr.mxu0 %v537_v38  ;;  %v469_v44 = vpop.permute.xlu0 %468 }
  0xdc   : > { %v473_v46 = vsel %vm472_vm4, %v469_v44, %v471_v43  ;;  %v474_v47 = vsel %vm472_vm4, %v471_v43, %v469_v44  ;;  %578 = vmatpush1.msra.mxu0 %v536_v40  ;;  %v650_v40 = vstv %s1086_s16  ;;  %v655_v44 = vstv %s1087_s28 }
  0xdd   : > { %v488_v48 = vmul.f32 %v481_v36, %v473_v46  ;;  %v489_v49 = vmul.f32 %v485_v39, %v474_v47  ;;  %579 = vmatprep.subr.mxu0 %v513_v42  ;;  %v660_v47 = vstv %s1088_s10 }
  0xde   : > { %580 = vmatpush1.msra.mxu0 %v512_v45 }
  0xdf   : > { %v447_v53 = vpop.permute.xlu1 %446  ;;  %581 = vmatprep.subr.mxu0 %v489_v49  ;;  %v445_v54 = vpop.permute.xlu0 %444 }
  0xe0   : > { %v449_v55 = vsel %vm448_vm5, %v445_v54, %v447_v53  ;;  %v450_v56 = vsel %vm448_vm5, %v447_v53, %v445_v54  ;;  %582 = vmatpush1.msra.mxu0 %v488_v48 }
  0xe1   : > { %v464_v57 = vmul.f32 %v457_v50, %v449_v55  ;;  %v465_v58 = vmul.f32 %v461_v51, %v450_v56  ;;  %v825_v55 = vld [vmem:[#allocation9 + $0xe] sm:$0x3] }
  0xe3   : > { %v421_v62 = vpop.permute.xlu1 %420  ;;  %583 = vmatprep.subr.mxu0 %v465_v58  ;;  %v419_v63 = vpop.permute.xlu0 %418  ;;  %v830_v58 = vrot.slane %v825_v55, %v1587_v20 }
  0xe4   : > { %v423_v1 = vsel %vm422_vm6, %v419_v63, %v421_v62  ;;  %v424_v3 = vsel %vm422_vm6, %v421_v62, %v419_v63  ;;  %584 = vmatpush1.msra.mxu0 %v464_v57  ;;  %v834_v57 = vrot.slane %v825_v55, %v1589_v21  ;;  %v669_v55 = vld [vmem:[#allocation9] sm:$0x3] }
  0xe5   : > { %v438_v4 = vmul.f32 %v431_v59, %v424_v3  ;;  %v439_v5 = vmul.f32 %v435_v60, %v423_v1  ;;  %585 = vmatprep.subr.mxu0 %v1550_v12  ;;  %v803_v59 = vld [vmem:[#allocation9 + $0xc] sm:$0x3] }
  0xe6   : > { %586 = vmatpush1.msra.mxu0 %v1544_v10  ;;  %v354_v10 = vld [vmem:[#allocation9] sm:$0x3]  ;;  %v808_v1 = vrot.slane %v803_v59, %v1587_v20  ;;  %v812_v3 = vrot.slane %v803_v59, %v1589_v21 }
  0xe7   : > { %v397_v9 = vpop.permute.xlu1 %396  ;;  %587 = vmatprep.subr.mxu0 %v439_v5  ;;  %v395_v11 = vpop.permute.xlu0 %394  ;;  %v359_v27 = vrot.slane %v354_v10, %v1587_v20  ;;  %v363_v28 = vrot.slane %v354_v10, %v1589_v21 }
  0xe8   : > { %v399_v13 = vsel %vm398_vm7, %v395_v11, %v397_v9  ;;  %v400_v14 = vsel %vm398_vm7, %v397_v9, %v395_v11  ;;  %588 = vmatpush1.msra.mxu0 %v438_v4 }
  0xe9   : > { %v414_v12 = vmul.f32 %v407_v6, %v400_v14  ;;  %v415_v15 = vmul.f32 %v411_v7, %v399_v13  ;;  %v781_v6 = vld [vmem:[#allocation9 + $0xa] sm:$0x3] }
  0xeb   : > { %v373_v18 = vpop.permute.xlu1 %372  ;;  %589 = vmatprep.subr.mxu0 %v415_v15  ;;  %v371_v22 = vpop.permute.xlu0 %370  ;;  %v790_v15 = vrot.slane %v781_v6, %v1589_v21 }
  0xec   : > { %v375_v23 = vsel %vm374_vm8, %v371_v22, %v373_v18  ;;  %v376_v24 = vsel %vm374_vm8, %v373_v18, %v371_v22  ;;  %590 = vmatpush1.msra.mxu0 %v414_v12  ;;  %v786_v12 = vrot.slane %v781_v6, %v1587_v20  ;;  %v841_v6 = vld [vmem:[#allocation7] sm:$0xff] }
  0xed   : > { %v390_v25 = vmul.f32 %v383_v16, %v376_v24  ;;  %v391_v26 = vmul.f32 %v387_v17, %v375_v23  ;;  %v759_v16 = vld [vmem:[#allocation9 + $0x8] sm:$0x3] }
  0xef   : > { %v348_v29 = vpop.permute.xlu1 %347  ;;  %591 = vmatprep.subr.mxu0 %v391_v26  ;;  %v346_v30 = vpop.permute.xlu0 %345  ;;  %v768_v26 = vrot.slane %v759_v16, %v1589_v21 }
  0xf0   : > { %v352_v31 = vsel %vm351_vm9, %v346_v30, %v348_v29  ;;  %v353_v32 = vsel %vm351_vm9, %v348_v29, %v346_v30  ;;  %592 = vmatpush1.msra.mxu0 %v390_v25  ;;  %v764_v25 = vrot.slane %v759_v16, %v1587_v20 }
  0xf1   : > { %v366_v33 = vmul.f32 %v359_v27, %v353_v32  ;;  %v367_v34 = vmul.f32 %v363_v28, %v352_v31  ;;  %v735_v27 = vld [vmem:[#allocation9 + $0x6] sm:$0x3] }
  0xf3   : > { %593 = vmatprep.subr.mxu0 %v367_v34  ;;  %v740_v34 = vrot.slane %v735_v27, %v1587_v20 }
  0xf4   : > { %594 = vmatpush1.msra.mxu0 %v366_v33 }
  0xf5   : > { %1089 = vmatmul.mubr.msk.f32.vlgmr.msra.gmra.mxu0 %vm559_vm10, %v540_v35  ;;  %v744_v35 = vrot.slane %v735_v27, %v1589_v21 }
  0xfc   : > { %v639_v36 = vpop.permute.xlu0 %638  ;;  %v646_v38 = vpop.permute.xlu1 %645 }
 0x1b5   : > { %v629_v37 = vpop.f32.mrf.mxu0 }
 0x1b6   : > { %v641_v39 = vmul.f32 %v639_v36, %v629_v37 }
 0x1b7   : > { %v631_v41 = vpop.f32.mrf.mxu0 }
 0x1b8   : > { %v648_v42 = vadd.f32 %v646_v38, %v641_v39  ;;  %v642_v43 = vmul.f32 %v639_v36, %v631_v41  ;;  %v713_v36 = vld [vmem:[#allocation9 + $0x4] sm:$0x3] }
 0x1ba   : > { %v651_v45 = vadd.f32 %v650_v40, %v648_v42  ;;  %v649_v46 = vadd.f32 %v646_v38, %v642_v43  ;;  %v718_v43 = vrot.slane %v713_v36, %v1587_v20 }
 0x1bc   : > { %vm653_vm11 = vcmp.ge.f32.partialorder %v651_v45, 0.0  ;;  %v656_v48 = vmul.f32 %v655_v44, %v651_v45  ;;  %v652_v49 = vadd.f32 %v650_v40, %v649_v46 }
 0x1be   : > { %v658_v50 = vsel %vm653_vm11, %v651_v45, %v656_v48  ;;  %vm654_vm12 = vcmp.ge.f32.partialorder %v652_v49, 0.0  ;;  %v657_v51 = vmul.f32 %v655_v44, %v652_v49  ;;  %v722_v44 = vrot.slane %v713_v36, %v1589_v21  ;;  %v691_v45 = vld [vmem:[#allocation9 + $0x2] sm:$0x3] }
 0x1bf   : > { %v1650_v52 = vadd.f32 %v660_v47, %v658_v50 }
 0x1c0   : > { %v659_v53 = vsel %vm654_vm12, %v652_v49, %v657_v51 }
 0x1c1   : > { %v1652_v54 = vadd.f32 %v660_v47, %v659_v53  ;;  %819 = vrot.lane.b32.xlu1 %v1650_v52, %s1367_s15  ;;  %v696_v53 = vrot.slane %v691_v45, %v1587_v20 }
 0x1c3   : > { %821 = vrot.lane.b32.xlu0 %v1652_v54, %s1367_s15  ;;  %s1098_s15 = sshll.u32 %s1433_s25, 8  ;;  %s1376_s25 = smov [#allocation11]  }
 0x1c4   : > { %s1290_s26 = sshll.u32 %s1376_s25, 4  ;;  %s1291_s26 = int_to_ptr.vmem [resolvable:$false] %s1290_s26 }
 0x1c5   : > { %797 = vrot.lane.b32.xlu1 %v1650_v52, %s1366_s12 }
 0x1c7   : > { %799 = vrot.lane.b32.xlu0 %v1652_v54, %s1366_s12  ;;  %s1079_s12 = sshll.u32 %s311_s11, 4 }
 0x1c9   : > { %775 = vrot.lane.b32.xlu1 %v1650_v52, %s1368_s13 }
 0x1cb   : > { %777 = vrot.lane.b32.xlu0 %v1652_v54, %s1368_s13  ;;  %s313_s13 = scalar_lea.vmem [#allocation11], %s1079_s12 }
 0x1cd   : > { %753 = vrot.lane.b32.xlu1 %v1650_v52, %s1369_s17 }
 0x1cf   : > { %755 = vrot.lane.b32.xlu0 %v1652_v54, %s1369_s17  ;;  %s953_s17 = sshll.u32 %s313_s13, 4  ;;  %s954_s17 = int_to_ptr.vmem [resolvable:$true] %s953_s17 }
 0x1d0   : > { %s1286_s14 = scalar_lea.vmem %s954_s17, 256  ;;  %p1293_p9 = scmp.lt.s32.totalorder %s954_s17, %s1291_s26 }
 0x1d1   : > { %729 = vrot.lane.b32.xlu1 %v1650_v52, %s1370_s18  ;;  %p1287_p8 = scmp.ne.s32.totalorder %s954_s17, %s1286_s14 }
 0x1d3   : > { %731 = vrot.lane.b32.xlu0 %v1652_v54, %s1370_s18  ;;  %p1288_p0 = pnand %p1287_p8, %p1794_p11 }
 0x1d5   : > { %707 = vrot.lane.b32.xlu1 %v1650_v52, %s1372_s19  ;;  %p1289_p1 = pneg %p1288_p0 }
 0x1d7   : > { %709 = vrot.lane.b32.xlu0 %v1652_v54, %s1372_s19 }
 0x1d9   : > { %685 = vrot.lane.b32.xlu1 %v1650_v52, %s1374_s20 }
 0x1db   : > { %687 = vrot.lane.b32.xlu0 %v1652_v54, %s1374_s20  ;;  %s951_s20 = scalar_lea.hbm %s1779_s6, %s1098_s15 }
 0x1dd   : > { %663 = vrot.lane.b32.xlu1 %v1650_v52, %s1375_s29 }
 0x1df   : > { %665 = vrot.lane.b32.xlu0 %v1652_v54, %s1375_s29  ;;  %s1292_s29 = scalar_lea.vmem %s1291_s26, 512 }
 0x1e0   : > { %p1294_p5 = scmp.lt.s32.totalorder %s1292_s29, %s1286_s14 }
 0x1e2   : > { %p1295_p6 = por %p1294_p5, %p1293_p9 }
 0x1e4   : > { %p1296_p10 = pnand %p1295_p6, %p1289_p1 }
 0x233   : > { %v820_v56 = vpop.permute.xlu1 %819 }
 0x235   : > { %v822_v60 = vpop.permute.xlu0 %821 }
 0x236   : > { %v823_v61 = vsel %vm520_vm3, %v820_v56, %v822_v60  ;;  %v824_v62 = vsel %vm520_vm3, %v822_v60, %v820_v56  ;;  %v674_v60 = vrot.slane %v669_v55, %v1587_v20 }
 0x237   : > { %v798_v63 = vpop.permute.xlu1 %797  ;;  %v838_v4 = vmul.f32 %v834_v57, %v824_v62  ;;  %v837_v5 = vmul.f32 %v830_v58, %v823_v61  ;;  %v678_v61 = vrot.slane %v669_v55, %v1589_v21 }
 0x239   : > { %v800_v7 = vpop.permute.xlu0 %799  ;;  %879 = vmatprep.subr.mxu1 %v838_v4 }
 0x23a   : > { %v801_v8 = vsel %vm496_vm2, %v798_v63, %v800_v7  ;;  %v802_v9 = vsel %vm496_vm2, %v800_v7, %v798_v63  ;;  %880 = vmatpush1.msra.mxu1 %v837_v5 }
 0x23b   : > { %v815_v11 = vmul.f32 %v808_v1, %v801_v8  ;;  %v816_v13 = vmul.f32 %v812_v3, %v802_v9  ;;  %v776_v14 = vpop.permute.xlu1 %775 }
 0x23d   : > { %v778_v17 = vpop.permute.xlu0 %777  ;;  %881 = vmatprep.subr.mxu1 %v816_v13 }
 0x23e   : > { %v779_v10 = vsel %vm472_vm4, %v776_v14, %v778_v17  ;;  %v780_v18 = vsel %vm472_vm4, %v778_v17, %v776_v14  ;;  %882 = vmatpush1.msra.mxu1 %v815_v11 }
 0x23f   : > { %v793_v22 = vmul.f32 %v786_v12, %v779_v10  ;;  %v794_v23 = vmul.f32 %v790_v15, %v780_v18  ;;  %v754_v24 = vpop.permute.xlu1 %753 }
 0x241   : > { %v756_v28 = vpop.permute.xlu0 %755  ;;  %883 = vmatprep.subr.mxu1 %v794_v23 }
 0x242   : > { %v757_v29 = vsel %vm448_vm5, %v754_v24, %v756_v28  ;;  %v758_v30 = vsel %vm448_vm5, %v756_v28, %v754_v24  ;;  %884 = vmatpush1.msra.mxu1 %v793_v22 }
 0x243   : > { %v771_v31 = vmul.f32 %v764_v25, %v757_v29  ;;  %v772_v32 = vmul.f32 %v768_v26, %v758_v30  ;;  %v730_v33 = vpop.permute.xlu1 %729 }
 0x245   : > { %v732_v37 = vpop.permute.xlu0 %731  ;;  %885 = vmatprep.subr.mxu1 %v772_v32 }
 0x246   : > { %v733_v38 = vsel %vm422_vm6, %v730_v33, %v732_v37  ;;  %v734_v39 = vsel %vm422_vm6, %v732_v37, %v730_v33  ;;  %886 = vmatpush1.msra.mxu1 %v771_v31 }
 0x247   : > { %v747_v40 = vmul.f32 %v740_v34, %v734_v39  ;;  %v748_v41 = vmul.f32 %v744_v35, %v733_v38  ;;  %887 = vmatprep.subr.mxu1 %v1652_v54  ;;  %v708_v42 = vpop.permute.xlu1 %707  ;;  %v700_v54 = vrot.slane %v691_v45, %v1589_v21 }
 0x248   : > { %888 = vmatpush1.msra.mxu1 %v1650_v52 }
 0x249   : > { %v710_v46 = vpop.permute.xlu0 %709  ;;  %889 = vmatprep.subr.mxu1 %v748_v41 }
 0x24a   : > { %v711_v47 = vsel %vm398_vm7, %v708_v42, %v710_v46  ;;  %v712_v48 = vsel %vm398_vm7, %v710_v46, %v708_v42  ;;  %890 = vmatpush1.msra.mxu1 %v747_v40 }
 0x24b   : > { %v725_v49 = vmul.f32 %v718_v43, %v712_v48  ;;  %v726_v50 = vmul.f32 %v722_v44, %v711_v47  ;;  %v686_v51 = vpop.permute.xlu1 %685 }
 0x24d   : > { %v688_v56 = vpop.permute.xlu0 %687  ;;  %891 = vmatprep.subr.mxu1 %v726_v50 }
 0x24e   : > { %v689_v52 = vsel %vm374_vm8, %v686_v51, %v688_v56  ;;  %v690_v57 = vsel %vm374_vm8, %v688_v56, %v686_v51  ;;  %892 = vmatpush1.msra.mxu1 %v725_v49 }
 0x24f   : > { %v703_v58 = vmul.f32 %v696_v53, %v690_v57  ;;  %v704_v59 = vmul.f32 %v700_v54, %v689_v52  ;;  %v664_v62 = vpop.permute.xlu1 %663 }
 0x251   : > { %v666_v63 = vpop.permute.xlu0 %665  ;;  %893 = vmatprep.subr.mxu1 %v704_v59 }
 0x252   : > { %v667_v1 = vsel %vm351_vm9, %v664_v62, %v666_v63  ;;  %v668_v3 = vsel %vm351_vm9, %v666_v63, %v664_v62  ;;  %894 = vmatpush1.msra.mxu1 %v703_v58 }
 0x253   : > { %v681_v4 = vmul.f32 %v674_v60, %v668_v3  ;;  %v682_v5 = vmul.f32 %v678_v61, %v667_v1 }
 0x255   : > { %895 = vmatprep.subr.mxu1 %v682_v5 }
 0x256   : > { %896 = vmatpush1.msra.mxu1 %v681_v4 }
 0x257   : > { %1090 = vmatmul.mubr.msk.f32.vlgmr.msra.gmra.mxu1 %vm559_vm10, %v841_v6 }
 0x317   : > { %v931_v20 = vpop.f32.mrf.mxu1 }
 0x318   : > { %v932_v21 = vadd.f32 %v931_v20, %v1538_v0 }
 0x319   : > { %v933_v7 = vpop.f32.mrf.mxu1 }
 0x31a   : > { %936 = vst [vmem:[%s313_s13] sm:$0xff] %v932_v21  ;;  %v934_v19 = vadd.f32 %v933_v7, %v1540_v2 }
 0x31c   : > { %937 = vst [vmem:[%s313_s13 + $0x8] sm:$0xff] %v934_v19 }
 0x31d   : > { %1299 = shalt.err (!%p1296_p10)
}
 0x31e   : > { %s1300_s16 = scalar_lea.hbm %s951_s20, 256  ;;  %s1304_s11 = scalar_lea.hbm %s1779_s6, 512 }
 0x31f   : > { %p1301_p2 = scmp.ne.s32.totalorder %s951_s20, %s1300_s16  ;;  %p1305_p4 = scmp.lt.s32.totalorder %s951_s20, %s1779_s6 }
 0x320   : > { %p1306_p12 = scmp.lt.s32.totalorder %s1304_s11, %s1300_s16 }
 0x321   : > { %p1302_p13 = pnand %p1301_p2, %p1794_p11 }
 0x322   : > { %p1307_p7 = por %p1306_p12, %p1305_p4 }
 0x323   : > { %p1303_p3 = pneg %p1302_p13 }
 0x325   : > { %p1308_p8 = pnand %p1307_p7, %p1303_p3 }
 0x327   : > { %1311 = shalt.err (!%p1308_p8)
}
 0x328   : > { %1115 = dma.vmem_to_hbm [thread:$0]  (%p1794_p11), %s954_s17, 256, %s951_s20, %s939_s9  }
 0x329 PF: > { %p1142_p0 = scmp.ge.s32.totalorder %s1358_s24, 2  ;;  %s965_s13 = sand.u32 1, %s1346_s21  }
 0x32a   : > { %p1795_p1 = scmp.ne.s32.totalorder %s1784_s8, 0  ;;  %s966_s18 = scalar_lea.sflag [#allocation5], %s965_s13 }
 0x32c   : > { %p1131_p9 = pnand %p1142_p0, %p1795_p1 }
 0x32e   : > { %p1132_p5 = pneg %p1131_p9 }
 0x330   : > { %1341 = dma.done.wait (%p1132_p5), %s966_s18, 256  }
 0x331   : > { %1343 = vsyncadd (%p1132_p5), %s966_s18, 4294967040  ;;  %p19_p6 = scmp.ge.s32.totalorder %s1437_s27, 4   ;;  %s1796_s21 = smov %s1350_s22 }
 0x332   : > { %s1797_s22 = smov %s1354_s23  ;;  %s1798_s23 = smov %s1448_s30 }
 0x333   : > { %s1799_s24 = smov %s1437_s27  ;;  %21 = sbr.rel (!%p19_p6) target bundleno = 6 (0x6), region = 107 }
 0x338   :  { %971 = vsyncpa [#allocation4], 1 }
 0x339   :  { %973 = vsyncpa [#allocation4 + $0x1], 1 }
 0x33a   :  { %974 = vsyncpa [#allocation8], 1 }
 0x33b   :  { %975 = vsyncpa [#allocation5], 1 }
 0x33c   :  { %977 = vsyncpa [#allocation5 + $0x1], 1 }
 0x33d   :  { %978 = vsyncpa [#allocation6], 1 }
 0x33e   :  { %980 = vsyncpa [#allocation6 + $0x1], 1 }

</bundles_post_ra>
